<compile_context>
chip_gen: v5e
topology: v5e:2x2
jax: 0.10.0
libtpu: 0.0.40
codegen_flags: <defaults>
</compile_context>

<pallas_src>
import math

import jax
import jax.numpy as jnp
from jax.experimental import pallas as pl
from jax.experimental.pallas import tpu as pltpu

_LANES = 128
_LOG2 = math.log(2.0)


def _make_logcosh_kernel(total, tm, need_mask):
    """Build a per-block partial-sum kernel.

    logcosh(x) = |x| + log(1 + exp(-2|x|)) - log(2)
    """

    def kernel(y_ref, yp_ref, part_ref):
        y = y_ref[...].astype(jnp.float32)
        yp = yp_ref[...].astype(jnp.float32)
        x = (y - yp) + jnp.float32(1e-12)   # parity with the PyTorch snippet
        ax = jnp.abs(x)
        lc = ax + jnp.log(1.0 + jnp.exp(-2.0 * ax)) - jnp.float32(_LOG2)

        if need_mask:
            # Zero out padded (out-of-range) elements exactly.
            i = pl.program_id(0)
            row = jax.lax.broadcasted_iota(jnp.int32, (tm, _LANES), 0)
            lane = jax.lax.broadcasted_iota(jnp.int32, (tm, _LANES), 1)
            flat = (i * tm + row) * _LANES + lane
            lc = jnp.where(flat < total, lc, 0.0)

        # Reduce only over the leading row-group axis; keep a vreg-shaped
        # (8, 128) partial so the hot loop stays on the VPU (no per-step
        # cross-lane XLU reduce, no masked (1, 1) store).
        part_ref[...] = jnp.sum(lc.reshape(tm // 8, 8, _LANES), axis=0)

    return kernel


def log_cosh_loss(y_t, y_prime_t, *, tile_rows=1024):
    assert y_t.shape == y_prime_t.shape
    total = 1
    for d in y_t.shape:
        total *= d

    rows = (total + _LANES - 1) // _LANES
    # Tile rows: multiple of 8, capped at tile_rows. 1024 rows x 128 lanes x
    # 4 B = 512 KiB/input/step; x2 inputs x2 pipeline buffers ~ 2 MiB, safely
    # under every generation's default scoped VMEM (no vmem_limit_bytes needed).
    tm = min(int(tile_rows), max(8, ((rows + 7) // 8) * 8))
    tm = (tm // 8) * 8
    num_blocks = (rows + tm - 1) // tm
    rows_padded = num_blocks * tm
    pad = rows_padded * _LANES - total

    y_flat = jnp.ravel(y_t)            # native dtype: no HBM-doubling f32 copy
    yp_flat = jnp.ravel(y_prime_t)
    if pad:
        y_flat = jnp.pad(y_flat, (0, pad))
        yp_flat = jnp.pad(yp_flat, (0, pad))
    y2 = y_flat.reshape(rows_padded, _LANES)
    yp2 = yp_flat.reshape(rows_padded, _LANES)

    kernel = _make_logcosh_kernel(total, tm, need_mask=(pad > 0))

    partials = pl.pallas_call(
        kernel,
        out_shape=jax.ShapeDtypeStruct((num_blocks * 8, _LANES), jnp.float32),
        grid_spec=pltpu.PrefetchScalarGridSpec(
            num_scalar_prefetch=0,
            grid=(num_blocks,),
            in_specs=[
                pl.BlockSpec((tm, _LANES), lambda i: (i, 0)),
                pl.BlockSpec((tm, _LANES), lambda i: (i, 0)),
            ],
            out_specs=pl.BlockSpec((8, _LANES), lambda i: (i, 0)),
        ),
        compiler_params=pltpu.CompilerParams(
            # Each block owns its own output slot -> safe to shard across TCs.
            dimension_semantics=("parallel",),
        ),
    )(y2, yp2)

    # Single tiny cross-lane reduce + mean, outside the hot loop.
    return (jnp.sum(partials) / jnp.float32(total)).astype(jnp.float32)


if __name__ == "__main__":
    key = jax.random.PRNGKey(0)
    k1, k2 = jax.random.split(key)

    shape = (2, 4, 16, 16)  # NCHW, 2048 elements
    y_t = jax.random.normal(k1, shape, dtype=jnp.float32)
    y_prime_t = jax.random.normal(k2, shape, dtype=jnp.float32)

    loss = log_cosh_loss(y_t, y_prime_t)
    jax.block_until_ready(loss)

    ref = jnp.mean(jnp.log(jnp.cosh((y_t - y_prime_t) + 1e-12)))
    assert jnp.allclose(loss, ref, rtol=1e-5, atol=1e-6), (loss, ref)

    # Second check: a shape whose element count does NOT divide 128
    # (exercises the padding + in-kernel mask path).
    shape2 = (3, 5, 7, 11)  # 1155 elements
    k3, k4 = jax.random.split(k2)
    a = jax.random.normal(k3, shape2, dtype=jnp.float32)
    b = jax.random.normal(k4, shape2, dtype=jnp.float32)
    loss2 = log_cosh_loss(a, b)
    jax.block_until_ready(loss2)
    ref2 = jnp.mean(jnp.log(jnp.cosh((a - b) + 1e-12)))
    assert jnp.allclose(loss2, ref2, rtol=1e-5, atol=1e-6), (loss2, ref2)

    print("KERNEL_OK")
</pallas_src>

<mosaic_0001>
module attributes {stable_mosaic.version = 11 : i64} {
  func.func @kernel(%arg0: i32, %arg1: memref<16x128xf32, #tpu.memory_space<vmem>>, %arg2: memref<16x128xf32, #tpu.memory_space<vmem>>, %arg3: memref<8x128xf32, #tpu.memory_space<vmem>>) attributes {dimension_semantics = [#tpu.dimension_semantics<parallel>], iteration_bounds = array<i64: 1>, scalar_prefetch = 0 : i64, scratch_operands = 0 : i64, tpu.core_type = #tpu.core_type<tc>, window_params = [{transform_indices = @transform_0, window_bounds = array<i64: 16, 128>}, {transform_indices = @transform_1, window_bounds = array<i64: 16, 128>}, {transform_indices = @transform_2, window_bounds = array<i64: 8, 128>}]} {
    %c0 = arith.constant 0 : index
    %c0_0 = arith.constant 0 : index
    %0 = vector.load %arg1[%c0, %c0_0] : memref<16x128xf32, #tpu.memory_space<vmem>>, vector<16x128xf32>
    %c0_1 = arith.constant 0 : index
    %c0_2 = arith.constant 0 : index
    %1 = vector.load %arg2[%c0_1, %c0_2] : memref<16x128xf32, #tpu.memory_space<vmem>>, vector<16x128xf32>
    %2 = arith.subf %0, %1 : vector<16x128xf32>
    %cst = arith.constant 9.99999996E-13 : f32
    %3 = vector.broadcast %cst : f32 to vector<16x128xf32>
    %4 = arith.addf %2, %3 : vector<16x128xf32>
    %5 = math.absf %4 : vector<16x128xf32>
    %cst_3 = arith.constant -2.000000e+00 : f32
    %6 = vector.broadcast %cst_3 : f32 to vector<16x128xf32>
    %7 = arith.mulf %6, %5 : vector<16x128xf32>
    %8 = math.exp %7 : vector<16x128xf32>
    %cst_4 = arith.constant 1.000000e+00 : f32
    %9 = vector.broadcast %cst_4 : f32 to vector<16x128xf32>
    %10 = arith.addf %9, %8 : vector<16x128xf32>
    %11 = math.log %10 : vector<16x128xf32>
    %12 = arith.addf %5, %11 : vector<16x128xf32>
    %cst_5 = arith.constant 0.693147182 : f32
    %13 = vector.broadcast %cst_5 : f32 to vector<16x128xf32>
    %14 = arith.subf %12, %13 : vector<16x128xf32>
    %15 = vector.shape_cast %14 : vector<16x128xf32> to vector<2x8x128xf32>
    %cst_6 = arith.constant dense<0.000000e+00> : vector<8x128xf32>
    %16 = vector.multi_reduction <add>, %15, %cst_6 [0] : vector<2x8x128xf32> to vector<8x128xf32>
    %c0_7 = arith.constant 0 : index
    %c0_8 = arith.constant 0 : index
    %17 = vector.load %arg3[%c0_7, %c0_8] : memref<8x128xf32, #tpu.memory_space<vmem>>, vector<8x128xf32>
    tpu.vector_store %arg3[%c0_7, %c0_8], %16 {strides = array<i32>} : memref<8x128xf32, #tpu.memory_space<vmem>>, vector<8x128xf32>,
    return
  }
  func.func @transform_0(%arg0: i32) -> (i32, i32) {
    %c0_i32 = arith.constant 0 : i32
    %c0_i32_0 = arith.constant 0 : i32
    return %arg0, %c0_i32 : i32, i32
  }
  func.func @transform_1(%arg0: i32) -> (i32, i32) {
    %c0_i32 = arith.constant 0 : i32
    %c0_i32_0 = arith.constant 0 : i32
    return %arg0, %c0_i32 : i32, i32
  }
  func.func @transform_2(%arg0: i32) -> (i32, i32) {
    %c0_i32 = arith.constant 0 : i32
    %c0_i32_0 = arith.constant 0 : i32
    return %arg0, %c0_i32 : i32, i32
  }
}

</mosaic_0001>

<bundles_post_ra>
// kernel: tpu_custom_call.1
= control target key start
LH: loop header
LB: loop body
LE: loop exit
PB: predicated region body
PF: predicated region fallthrough
CT: control target
= control target key end

     0   :  { %7 = vsyncpa [#allocation3], 0  ;;  %s212_s0 = inlined_call_operand.hbm [shape: f32[16,128], index: 0, kind: input, shape index: {}]   ;;  %s213_s1 = inlined_call_operand.hbm [shape: f32[16,128], index: 1, kind: input, shape index: {}]   ;;  %s214_s2 = inlined_call_operand.hbm [shape: f32[8,128], index: 2, kind: output, shape index: {}]  }
   0x1   :  { %8 = vsyncpa [#allocation6], 0 }
   0x2   :  { %9 = vsyncpa [#allocation4], 0  ;;  %s14_s11 = sshll.u32 %s212_s0, 4  ;;  %s183_s12 = smov [#allocation2]   ;;  %s15_s11 = int_to_ptr.hbm [resolvable:$true] %s14_s11 }
   0x3   :  { %s16_s13 = sshll.u32 %s183_s12, 4  ;;  %s27_s16 = sshll.u32 %s213_s1, 4  ;;  %s17_s13 = int_to_ptr.vmem [resolvable:$true] %s16_s13  ;;  %s28_s16 = int_to_ptr.hbm [resolvable:$true] %s27_s16 }
   0x4   :  { %s184_s17 = smov 128   ;;  %s185_s18 = smov 8  }
   0x5   :  { %22 = dma.hbm_to_vmem [thread:$0]  %s15_s11, 256, %s17_s13, [#allocation3], %s184_s17, %s184_s17, %s185_s18  }
   0x6   :  { %s186_s19 = smov [#allocation5]  }
   0x7   :  { %s29_s20 = sshll.u32 %s186_s19, 4  ;;  %s30_s20 = int_to_ptr.vmem [resolvable:$true] %s29_s20 }
   0x8   :  { %35 = dma.hbm_to_vmem [thread:$0]  %s28_s16, 256, %s30_s20, [#allocation6], %s184_s17, %s184_s17, %s185_s18  }
   0x9   :  { %177 = dma.done.wait [#allocation3], 256  }
   0xa   :  { %178 = vsyncadd [#allocation3], 4294967040 }
   0xb   :  { %179 = dma.done.wait [#allocation6], 256  }
   0xc   :  { %180 = vsyncadd [#allocation6], 4294967040  ;;  %v44_v0 = vld [vmem:[#allocation2] sm:$0xff]  ;;  %v45_v1 = vld [vmem:[#allocation2 + $0x8] sm:$0xff]  ;;  %s187_s0 = smov [#allocation7]   ;;  %s79_s23 = sshll.u32 %s214_s2, 4  ;;  %s80_s23 = int_to_ptr.hbm [resolvable:$true] %s79_s23 }
   0xd   :  { %v46_v2 = vld [vmem:[#allocation5] sm:$0xff]  ;;  %v47_v3 = vld [vmem:[#allocation5 + $0x8] sm:$0xff]  ;;  %s77_s1 = sshll.u32 %s187_s0, 4  ;;  %s78_s1 = int_to_ptr.vmem [resolvable:$true] %s77_s1 }
   0xe   :  { %v48_v4 = vsub.f32 %v44_v0, %v46_v2  ;;  %v49_v5 = vsub.f32 %v45_v1, %v47_v3 }
  0x10   :  { %v50_v6 = vadd.f32 1e-12, %v48_v4  ;;  %v51_v7 = vadd.f32 1e-12, %v49_v5 }
  0x12   :  { %v52_v8 = vand.u32 2147483647, %v50_v6  ;;  %v53_v9 = vand.u32 2147483647, %v51_v7 }
  0x14   :  { %v54_v10 = vmul.f32 -2.0, %v52_v8  ;;  %v55_v11 = vmul.f32 -2.0, %v53_v9 }
  0x16   :  { %v56_v12 = vmul.f32 1.442695, %v54_v10  ;;  %v58_v13 = vmul.f32 1.442695, %v55_v11 }
  0x18   :  { %97 = vpow2.f32 %v56_v12 }
  0x19   :  { %99 = vpow2.f32 %v58_v13 }
  0x1e   :  { %v98_v14 = vpop.eup %97 }
  0x1f   :  { %v100_v15 = vpop.eup %99  ;;  %v60_v16 = vadd.f32 1.0, %v98_v14 }
  0x20   :  { %v61_v17 = vadd.f32 1.0, %v100_v15 }
  0x21   :  { %101 = vlog2.f32 %v60_v16 }
  0x22   :  { %103 = vlog2.f32 %v61_v17 }
  0x27   :  { %v102_v18 = vpop.eup %101 }
  0x28   :  { %v104_v19 = vpop.eup %103  ;;  %v63_v20 = vmul.f32 0.6931472, %v102_v18 }
  0x29   :  { %v65_v21 = vmul.f32 0.6931472, %v104_v19 }
  0x2a   :  { %v66_v22 = vadd.f32 %v63_v20, %v52_v8 }
  0x2b   :  { %v67_v23 = vadd.f32 %v65_v21, %v53_v9 }
  0x2c   :  { %v90_v24 = vadd.f32 -0.6931472, %v66_v22 }
  0x2d   :  { %v91_v25 = vadd.f32 -0.6931472, %v67_v23 }
  0x2f   :  { %v70_v26 = vadd.f32 %v91_v25, %v90_v24 }
  0x31   :  { %71 = vst [vmem:[#allocation7] sm:$0xff] %v70_v26 }
  0x32   :  { %82 = dma.vmem_to_hbm [thread:$0]  %s78_s1, 128, %s80_s23, [#allocation4]  }
  0x33   :  { %181 = dma.done.wait [#allocation4], 128  }
  0x34   :  { %182 = vsyncadd [#allocation4], 4294967168 }
  0x35   :  { %87 = vsyncpa [#allocation3], 1 }
  0x36   :  { %88 = vsyncpa [#allocation6], 1 }
  0x37   :  { %89 = vsyncpa [#allocation4], 1 }

</bundles_post_ra>
